<compile_context>
chip_gen: v7x
topology: tpu7x:2x2x1
jax: 0.10.0
libtpu: 0.0.40
codegen_flags: <defaults>
</compile_context>

<pallas_src>
import functools

import jax
import jax.numpy as jnp
from jax.experimental import pallas as pl
from jax.experimental.pallas import tpu as pltpu

_LANE = 128


def _tpu_kind():
    try:
        return jax.devices()[0].device_kind.lower()
    except Exception:
        return ""


def _generation_config():
    """Returns (num_cores_for_grid_split, target_block_rows)."""
    kind = _tpu_kind()
    if "v7" in kind:
        # 2 TensorCores/chip, fastest HBM -> big tiles, 2-way core split.
        return 2, 8192
    if "v6" in kind:
        # Single TensorCore, 32 MiB default scoped VMEM -> big tiles, no split.
        return 1, 8192
    # v5e / unknown: single TensorCore, conservative tile size.
    return 1, 4096


def _masked_mse_kernel(x_ref, t_ref, m_ref, out_ref, *, block_rows, acc_rows,
                       max_block, tail_valid_rows, has_edge, has_dups,
                       mask_is_discrete):
    c = pl.program_id(0)            # core-split axis ("parallel")
    j = pl.program_id(1)            # reduction axis  ("arbitrary")
    steps = pl.num_programs(1)

    # Zero this core's resident accumulator block on its first step.
    @pl.when(j == 0)
    def _init():
        out_ref[...] = jnp.zeros_like(out_ref)

    def masked_sq():
        # Upcast on the in-VMEM tiles so bf16 / bool / int8 inputs stream at
        # native width; arithmetic is f32 (works on v5e's VPU too).
        x = x_ref[...].astype(jnp.float32)
        t = t_ref[...].astype(jnp.float32)
        d = x - t
        sq = d * d
        m = m_ref[...]
        if mask_is_discrete:
            # Single select per vreg instead of convert + multiply.
            return jnp.where(m != 0, sq, 0.0)
        return sq * m.astype(jnp.float32)

    def fold_accumulate(v):
        # VPU-only partial reduction into the resident (acc_rows, 128) block;
        # no XLU cross-lane reduce, no SMEM RMW per step.
        out_ref[...] += jnp.sum(
            v.reshape(block_rows // acc_rows, acc_rows, _LANE), axis=0)

    if not (has_edge or has_dups):
        # Fully aligned grid: every block is full and unique.
        fold_accumulate(masked_sq())
        return

    logical_blk = c * steps + j

    if has_edge:
        @pl.when(logical_blk < max_block)
        def _full_blocks():
            fold_accumulate(masked_sq())

        @pl.when(logical_blk == max_block)
        def _edge_block():
            v = masked_sq()
            row = jax.lax.broadcasted_iota(jnp.int32, v.shape, 0)
            # jnp.where (select, NOT multiply): stale NaN/Inf garbage in the
            # un-DMA'd region of the ragged block cannot poison the sum.
            fold_accumulate(jnp.where(row < tail_valid_rows, v, 0.0))
        # logical_blk > max_block (clamped duplicate from core split):
        # accumulate nothing.
    else:
        # Only duplicate (clamped) blocks from the core split need skipping.
        @pl.when(logical_blk <= max_block)
        def _full_blocks():
            fold_accumulate(masked_sq())


def masked_mse_loss(inp, tgt, msk):
    """sum((flatten(inp) - flatten(tgt))**2 * flatten(msk)) -> float32 scalar."""
    n = int(inp.size)
    if n == 0:
        return jnp.float32(0.0)

    flat_x = jnp.ravel(inp)
    flat_t = jnp.ravel(tgt)
    flat_m = jnp.ravel(msk)

    rows_main = n // _LANE
    n_main = rows_main * _LANE

    # <128-element ragged tail reduced in plain JAX (no full-array pad copy).
    tail = None
    if n_main < n:
        tx = flat_x[n_main:].astype(jnp.float32)
        tt = flat_t[n_main:].astype(jnp.float32)
        tm = flat_m[n_main:].astype(jnp.float32)
        tail = jnp.sum((tx - tt) ** 2 * tm)

    if rows_main == 0:
        return tail if tail is not None else jnp.float32(0.0)

    num_cores, target_rows = _generation_config()

    # Tile rows: multiple of 8 sublanes, as big as useful, never (much) bigger
    # than the data itself.
    block_rows = min(target_rows, -(-rows_main // 8) * 8)
    acc_rows = 32 if block_rows % 32 == 0 else 8

    # 128-aligned prefix as a (rows_main, 128) slab (zero-copy when aligned).
    x2 = flat_x[:n_main].reshape(rows_main, _LANE)
    t2 = flat_t[:n_main].reshape(rows_main, _LANE)
    m2 = flat_m[:n_main].reshape(rows_main, _LANE)

    num_row_blocks = -(-rows_main // block_rows)
    steps_per_core = -(-num_row_blocks // num_cores)
    max_block = num_row_blocks - 1
    tail_valid_rows = rows_main - max_block * block_rows
    has_edge = tail_valid_rows != block_rows
    has_dups = num_cores * steps_per_core != num_row_blocks

    if has_dups:
        def in_map(c, j):
            # Clamp so fully-out-of-range logical blocks re-read the last valid
            # block; their contribution is skipped in-kernel.
            return (jnp.minimum(c * steps_per_core + j, max_block), 0)
    else:
        def in_map(c, j):
            return (c * steps_per_core + j, 0)

    in_spec = pl.BlockSpec((block_rows, _LANE), in_map)
    # Lane-dense (acc_rows, 128) f32 partial per core; final reduce in XLA.
    out_spec = pl.BlockSpec((acc_rows, _LANE), lambda c, j: (c, 0))

    mask_is_discrete = bool(
        jnp.issubdtype(m2.dtype, jnp.bool_) or jnp.issubdtype(m2.dtype, jnp.integer))

    kernel = functools.partial(
        _masked_mse_kernel,
        block_rows=block_rows,
        acc_rows=acc_rows,
        max_block=max_block,
        tail_valid_rows=tail_valid_rows,
        has_edge=has_edge,
        has_dups=has_dups,
        mask_is_discrete=mask_is_discrete,
    )

    in_bytes = sum(a.dtype.itemsize for a in (x2, t2, m2)) * n_main
    out_bytes = num_cores * acc_rows * _LANE * 4
    # Double-buffered input tiles + output + margin; explicit so large tiles
    # never trip the default scoped-VMEM limit, capped under physical VMEM.
    block_bytes = sum(2 * block_rows * _LANE * a.dtype.itemsize
                      for a in (x2, t2, m2))
    vmem_limit = min(block_bytes + 2 * out_bytes + (8 << 20), 48 << 20)

    partials = pl.pallas_call(
        kernel,
        out_shape=jax.ShapeDtypeStruct((num_cores * acc_rows, _LANE),
                                       jnp.float32),
        grid=(num_cores, steps_per_core),
        in_specs=[in_spec, in_spec, in_spec],
        out_specs=out_spec,
        compiler_params=pltpu.CompilerParams(
            # TODO(synk): on v7x, verify in xprof that the leading "parallel"
            # axis really shards across both TensorCores; if not, switch to
            # pltpu.CORE_PARALLEL / pl.core_map with an explicit half split.
            dimension_semantics=("parallel", "arbitrary"),
            vmem_limit_bytes=vmem_limit),
        cost_estimate=pl.CostEstimate(
            flops=4 * n, transcendentals=0,
            bytes_accessed=in_bytes + out_bytes),
    )(x2, t2, m2)

    # Tiny cross-lane / cross-core reduce in plain JAX (better conditioned
    # than a single in-kernel scalar accumulator).
    total = jnp.sum(partials)
    if tail is not None:
        total = total + tail
    return total


if __name__ == "__main__":
    key = jax.random.PRNGKey(0)
    k1, k2, k3 = jax.random.split(key, 3)

    # Small NCHW-style shapes (batch=2, channels=4, 16x16 spatial).
    shape = (2, 4, 16, 16)
    x = jax.random.normal(k1, shape, dtype=jnp.float32)
    target = jax.random.normal(k2, shape, dtype=jnp.float32)
    mask = (jax.random.uniform(k3, shape) > 0.5).astype(jnp.float32)

    result = jax.block_until_ready(masked_mse_loss(x, target, mask))

    # Reference check in plain JAX (mirrors the PyTorch forward exactly).
    ref = jnp.sum((jnp.ravel(x) - jnp.ravel(target)) ** 2.0 * jnp.ravel(mask))
    assert jnp.allclose(result, ref, rtol=1e-5, atol=1e-5), (result, ref)

    print("KERNEL_OK")
</pallas_src>

<mosaic_0001>
module attributes {stable_mosaic.version = 11 : i64} {
  func.func @_masked_mse_kernel(%arg0: i32, %arg1: i32, %arg2: memref<16x128xf32, #tpu.memory_space<vmem>>, %arg3: memref<16x128xf32, #tpu.memory_space<vmem>>, %arg4: memref<16x128xf32, #tpu.memory_space<vmem>>, %arg5: memref<8x128xf32, #tpu.memory_space<vmem>>) attributes {dimension_semantics = [#tpu.dimension_semantics<parallel>, #tpu.dimension_semantics<arbitrary>], iteration_bounds = array<i64: 1, 1>, scalar_prefetch = 0 : i64, scratch_operands = 0 : i64, tpu.core_type = #tpu.core_type<tc>, window_params = [{transform_indices = @transform_0, window_bounds = array<i64: 16, 128>}, {transform_indices = @transform_1, window_bounds = array<i64: 16, 128>}, {transform_indices = @transform_2, window_bounds = array<i64: 16, 128>}, {transform_indices = @transform_3, window_bounds = array<i64: 8, 128>}]} {
    %c0_i32 = arith.constant 0 : i32
    %0 = arith.cmpi eq, %arg1, %c0_i32 : i32
    %1 = arith.extui %0 : i1 to i32
    %c0_i32_0 = arith.constant 0 : i32
    %2 = arith.cmpi ne, %1, %c0_i32_0 : i32
    scf.if %2 {
      %cst_10 = arith.constant 0.000000e+00 : f32
      %14 = vector.broadcast %cst_10 : f32 to vector<8x128xf32>
      %c0_11 = arith.constant 0 : index
      %c0_12 = arith.constant 0 : index
      %15 = vector.load %arg5[%c0_11, %c0_12] : memref<8x128xf32, #tpu.memory_space<vmem>>, vector<8x128xf32>
      tpu.vector_store %arg5[%c0_11, %c0_12], %14 {strides = array<i32>} : memref<8x128xf32, #tpu.memory_space<vmem>>, vector<8x128xf32>,
    } else {
    }
    %c0 = arith.constant 0 : index
    %c0_1 = arith.constant 0 : index
    %3 = vector.load %arg2[%c0, %c0_1] : memref<16x128xf32, #tpu.memory_space<vmem>>, vector<16x128xf32>
    %c0_2 = arith.constant 0 : index
    %c0_3 = arith.constant 0 : index
    %4 = vector.load %arg3[%c0_2, %c0_3] : memref<16x128xf32, #tpu.memory_space<vmem>>, vector<16x128xf32>
    %5 = arith.subf %3, %4 : vector<16x128xf32>
    %6 = arith.mulf %5, %5 : vector<16x128xf32>
    %c0_4 = arith.constant 0 : index
    %c0_5 = arith.constant 0 : index
    %7 = vector.load %arg4[%c0_4, %c0_5] : memref<16x128xf32, #tpu.memory_space<vmem>>, vector<16x128xf32>
    %8 = arith.mulf %6, %7 : vector<16x128xf32>
    %c0_6 = arith.constant 0 : index
    %c0_7 = arith.constant 0 : index
    %9 = vector.load %arg5[%c0_6, %c0_7] : memref<8x128xf32, #tpu.memory_space<vmem>>, vector<8x128xf32>
    %10 = vector.shape_cast %8 : vector<16x128xf32> to vector<2x8x128xf32>
    %cst = arith.constant dense<0.000000e+00> : vector<8x128xf32>
    %11 = vector.multi_reduction <add>, %10, %cst [0] : vector<2x8x128xf32> to vector<8x128xf32>
    %12 = arith.addf %9, %11 : vector<8x128xf32>
    %c0_8 = arith.constant 0 : index
    %c0_9 = arith.constant 0 : index
    %13 = vector.load %arg5[%c0_8, %c0_9] : memref<8x128xf32, #tpu.memory_space<vmem>>, vector<8x128xf32>
    tpu.vector_store %arg5[%c0_8, %c0_9], %12 {strides = array<i32>} : memref<8x128xf32, #tpu.memory_space<vmem>>, vector<8x128xf32>,
    return
  }
  func.func @transform_0(%arg0: i32, %arg1: i32) -> (i32, i32) {
    %c1_i32 = arith.constant 1 : i32
    %0 = arith.muli %arg0, %c1_i32 : i32
    %1 = arith.addi %0, %arg1 : i32
    %c0_i32 = arith.constant 0 : i32
    %c0_i32_0 = arith.constant 0 : i32
    return %1, %c0_i32 : i32, i32
  }
  func.func @transform_1(%arg0: i32, %arg1: i32) -> (i32, i32) {
    %c1_i32 = arith.constant 1 : i32
    %0 = arith.muli %arg0, %c1_i32 : i32
    %1 = arith.addi %0, %arg1 : i32
    %c0_i32 = arith.constant 0 : i32
    %c0_i32_0 = arith.constant 0 : i32
    return %1, %c0_i32 : i32, i32
  }
  func.func @transform_2(%arg0: i32, %arg1: i32) -> (i32, i32) {
    %c1_i32 = arith.constant 1 : i32
    %0 = arith.muli %arg0, %c1_i32 : i32
    %1 = arith.addi %0, %arg1 : i32
    %c0_i32 = arith.constant 0 : i32
    %c0_i32_0 = arith.constant 0 : i32
    return %1, %c0_i32 : i32, i32
  }
  func.func @transform_3(%arg0: i32, %arg1: i32) -> (i32, i32) {
    %c0_i32 = arith.constant 0 : i32
    %c0_i32_0 = arith.constant 0 : i32
    return %arg0, %c0_i32 : i32, i32
  }
}

</mosaic_0001>

<bundles_post_ra>
// kernel: tpu_custom_call.1
= control target key start
LH: loop header
LB: loop body
LE: loop exit
PB: predicated region body
PF: predicated region fallthrough
CT: control target
= control target key end

     0   :  { %8 = vsyncpa [#allocation3], 0  ;;  %s302_s0 = inlined_call_operand.hbm [shape: f32[16,128], index: 0, kind: input, shape index: {}]   ;;  %s303_s1 = inlined_call_operand.hbm [shape: f32[16,128], index: 1, kind: input, shape index: {}]   ;;  %s304_s2 = inlined_call_operand.hbm [shape: f32[16,128], index: 2, kind: input, shape index: {}]   ;;  %s305_s3 = inlined_call_operand.hbm [shape: f32[8,128], index: 3, kind: output, shape index: {}]  }
   0x1   :  { %9 = vsyncpa [#allocation6], 0 }
   0x2   :  { %10 = vsyncpa [#allocation4], 0  ;;  %s212_s12 = smov [#allocation5]   ;;  %s213_s14 = smov [#allocation2]  }
   0x3   :  { %s36_s13 = sshll.u32 %s212_s12, 4  ;;  %s20_s15 = sshll.u32 %s213_s14, 4  ;;  %s37_s13 = int_to_ptr.vmem [resolvable:$true] %s36_s13  ;;  %s238_s15 = int_to_ptr.vmem [resolvable:$true] %s20_s15 }
   0x4   :  { %s118_s18 = scalar_lea.hbm %s303_s1, 256 }
   0x5   :  { %p119_p0 = scmp.ne.s32.totalorder %s303_s1, %s118_s18  ;;  %p122_p1 = scmp.lt.u32.totalorder %s118_s18, %s303_s1 }
   0x7   :  { %p124_p2 = pnand %p122_p1, %p119_p0 }
   0x9   :  { %127 = shalt.err (!%p124_p2)
}
   0xa   :  { %s128_s23 = scalar_lea.vmem %s37_s13, 256  ;;  %p133_p4 = scmp.lt.s32.totalorder %s37_s13, %s37_s13 }
   0xb   :  { %p129_p3 = scmp.ne.s32.totalorder %s37_s13, %s128_s23  ;;  %p134_p5 = scmp.lt.s32.totalorder %s128_s23, %s128_s23 }
   0xd   :  { %p135_p6 = por %p134_p5, %p133_p4 }
   0xf   :  { %p136_p7 = pnand %p135_p6, %p129_p3 }
  0x11   :  { %139 = shalt.err (!%p136_p7)
}
  0x12   :  { %s214_s24 = smov 128   ;;  %s215_s25 = smov 8  }
  0x13   :  { %42 = dma.hbm_to_vmem [thread:$0]  %s303_s1, 256, %s37_s13, [#allocation6], %s214_s24, %s214_s24, %s215_s25  }
  0x14   :  { %s140_s30 = scalar_lea.hbm %s302_s0, 256 }
  0x15   :  { %p141_p8 = scmp.ne.s32.totalorder %s302_s0, %s140_s30  ;;  %p144_p9 = scmp.lt.u32.totalorder %s140_s30, %s302_s0 }
  0x17   :  { %p146_p10 = pnand %p144_p9, %p141_p8 }
  0x19   :  { %149 = shalt.err (!%p146_p10)
}
  0x1a   :  { %s150_s8 = scalar_lea.vmem %s238_s15, 256  ;;  %p155_p12 = scmp.lt.s32.totalorder %s238_s15, %s238_s15 }
  0x1b   :  { %p151_p11 = scmp.ne.s32.totalorder %s238_s15, %s150_s8  ;;  %p156_p13 = scmp.lt.s32.totalorder %s150_s8, %s150_s8 }
  0x1d   :  { %p157_p0 = por %p156_p13, %p155_p12 }
  0x1f   :  { %p158_p1 = pnand %p157_p0, %p151_p11 }
  0x21   :  { %161 = shalt.err (!%p158_p1)
}
  0x22   :  { %26 = dma.hbm_to_vmem [thread:$0]  %s302_s0, 256, %s238_s15, [#allocation3], %s214_s24, %s214_s24, %s215_s25  }
  0x23   :  { %s216_s10 = smov [#allocation7]   ;;  %s162_s14 = scalar_lea.hbm %s304_s2, 256 }
  0x24   :  { %s52_s11 = sshll.u32 %s216_s10, 4  ;;  %p163_p2 = scmp.ne.s32.totalorder %s304_s2, %s162_s14  ;;  %s53_s11 = int_to_ptr.vmem [resolvable:$true] %s52_s11 }
  0x25   :  { %p166_p3 = scmp.lt.u32.totalorder %s162_s14, %s304_s2 }
  0x27   :  { %p168_p4 = pnand %p166_p3, %p163_p2 }
  0x29   :  { %171 = shalt.err (!%p168_p4)
}
  0x2a   :  { %s172_s20 = scalar_lea.vmem %s53_s11, 256  ;;  %p177_p6 = scmp.lt.s32.totalorder %s53_s11, %s53_s11 }
  0x2b   :  { %p173_p5 = scmp.ne.s32.totalorder %s53_s11, %s172_s20  ;;  %p178_p7 = scmp.lt.s32.totalorder %s172_s20, %s172_s20 }
  0x2d   :  { %p179_p8 = por %p178_p7, %p177_p6 }
  0x2f   :  { %p180_p9 = pnand %p179_p8, %p173_p5 }
  0x31   :  { %183 = shalt.err (!%p180_p9)
}
  0x32   :  { %58 = dma.hbm_to_vmem [thread:$0]  %s304_s2, 256, %s53_s11, [#allocation6], %s214_s24, %s214_s24, %s215_s25  }
  0x33   :  { %206 = dma.done.wait [#allocation3], 256  }
  0x34   :  { %207 = vsyncadd [#allocation3], 4294967040 }
  0x35   :  { %208 = dma.done.wait [#allocation6], 512  }
  0x36   :  { %209 = vsyncadd [#allocation6], 4294966784  ;;  %v79_v0 = vld [vmem:[#allocation2] sm:$0xff]  ;;  %v80_v1 = vld [vmem:[#allocation2 + $0x8] sm:$0xff]  ;;  %s217_s21 = smov [#allocation8]  }
  0x37   :  { %v81_v2 = vld [vmem:[#allocation5] sm:$0xff]  ;;  %v82_v3 = vld [vmem:[#allocation5 + $0x8] sm:$0xff]  ;;  %v87_v6 = vld [vmem:[#allocation7] sm:$0xff]  ;;  %s101_s22 = sshll.u32 %s217_s21, 4  ;;  %s102_s22 = int_to_ptr.vmem [resolvable:$true] %s101_s22 }
  0x38   :  { %v83_v4 = vsub.f32 %v79_v0, %v81_v2  ;;  %v84_v5 = vsub.f32 %v80_v1, %v82_v3  ;;  %v88_v8 = vld [vmem:[#allocation7 + $0x8] sm:$0xff]  ;;  %s184_s2 = scalar_lea.vmem %s102_s22, 128  ;;  %p189_p11 = scmp.lt.s32.totalorder %s102_s22, %s102_s22 }
  0x39   :  { %p185_p10 = scmp.ne.s32.totalorder %s102_s22, %s184_s2  ;;  %p190_p12 = scmp.lt.s32.totalorder %s184_s2, %s184_s2 }
  0x3a   :  { %v85_v7 = vmul.f32 %v83_v4, %v83_v4  ;;  %v86_v9 = vmul.f32 %v84_v5, %v84_v5 }
  0x3b   :  { %p191_p13 = por %p190_p12, %p189_p11 }
  0x3c   :  { %v89_v10 = vmul.f32 %v87_v6, %v85_v7  ;;  %v90_v11 = vmul.f32 %v88_v8, %v86_v9 }
  0x3d   :  { %p192_p0 = pnand %p191_p13, %p185_p10 }
  0x3e   :  { %v92_v12 = vadd.f32 %v90_v11, %v89_v10 }
  0x40   :  { %94 = vst [vmem:[#allocation8] sm:$0xff] %v92_v12 }
  0x41   :  { %195 = shalt.err (!%p192_p0)
}
  0x42   :  { %s196_s25 = scalar_lea.hbm %s305_s3, 128 }
  0x43   :  { %p197_p1 = scmp.ne.s32.totalorder %s305_s3, %s196_s25  ;;  %p200_p2 = scmp.lt.u32.totalorder %s196_s25, %s305_s3 }
  0x45   :  { %p202_p3 = pnand %p200_p2, %p197_p1 }
  0x47   :  { %205 = shalt.err (!%p202_p3)
}
  0x48   :  { %104 = dma.vmem_to_hbm [thread:$0]  %s102_s22, 128, %s305_s3, [#allocation4]  }
  0x49   :  { %210 = dma.done.wait [#allocation4], 128  }
  0x4a   :  { %211 = vsyncadd [#allocation4], 4294967168 }
  0x4b   :  { %108 = vsyncpa [#allocation3], 1 }
  0x4c   :  { %109 = vsyncpa [#allocation6], 1 }
  0x4d   :  { %110 = vsyncpa [#allocation4], 1 }

</bundles_post_ra>
